<compile_context>
chip_gen: v7x
topology: tpu7x:2x2x1
jax: 0.10.0
libtpu: 0.0.40
codegen_flags: <defaults>
</compile_context>

<pallas_src>
import jax
import jax.numpy as jnp
from jax.experimental import pallas as pl
from jax.experimental.pallas import tpu as pltpu

ZDIM = 8
INPUT_SIZE = 16
H0 = 32
H1 = 64
OUT_DIM = INPUT_SIZE * 2 - 1        # 31
D = INPUT_SIZE - 1                  # 15
LANES = 128                         # lane-dense width for all tiles
BATCH = 8
BN_EPS = 1e-5

# ---- packed parameter slab row layout (one [PACK_ROWS, 128] f32 tile) -------
ROW_W0 = 0                          # rows [0,   8)   w0: (zdim, 128) lane-padded
ROW_W1 = ROW_W0 + ZDIM              # rows [8, 136)   w1: (128, 128) zero rows/cols
ROW_W2 = ROW_W1 + LANES             # rows [136,264)  w2: (128, 128) zero rows/cols
ROW_P = ROW_W2 + LANES              # rows [264,272)  g0, be0, g1, be1, b2 (+3 spare)
PACK_ROWS = ROW_P + 8               # 272  (multiple of 8 sublanes)


def _decoder_kernel(z_ref, p_ref, out_ref):
    """Whole decoder forward on one VMEM-resident batch tile (grid=())."""
    f32 = jnp.float32

    # --- static views into the single packed parameter slab (zero-cost) -----
    w0 = p_ref[ROW_W0:ROW_W0 + ZDIM, :]       # [8,   128]
    w1 = p_ref[ROW_W1:ROW_W1 + LANES, :]      # [128, 128]
    w2 = p_ref[ROW_W2:ROW_W2 + LANES, :]      # [128, 128]
    g0 = p_ref[ROW_P + 0:ROW_P + 1, :]        # [1, 128] (0 beyond H0)
    be0 = p_ref[ROW_P + 1:ROW_P + 2, :]
    g1 = p_ref[ROW_P + 2:ROW_P + 3, :]        # [1, 128] (0 beyond H1)
    be1 = p_ref[ROW_P + 3:ROW_P + 4, :]
    b2 = p_ref[ROW_P + 4:ROW_P + 5, :]        # [1, 128] (0 beyond OUT_DIM)

    # --- layer 0: Linear(zdim -> 32) + BN + ReLU  (128-lane padded) ---------
    # Linear bias omitted: exactly cancelled by training-mode BN mean subtraction.
    h = jnp.dot(z_ref[...], w0, preferred_element_type=f32)          # [B,128]
    mean0 = jnp.mean(h, axis=0, keepdims=True)
    c0 = h - mean0
    var0 = jnp.mean(c0 * c0, axis=0, keepdims=True)                  # two-pass var
    scale0 = g0 * jax.lax.rsqrt(var0 + BN_EPS)
    h = jnp.maximum(c0 * scale0 + be0, 0.0)                          # padded lanes stay 0

    # --- layer 1: Linear(32 -> 64) + BN + ReLU -------------------------------
    h = jnp.dot(h, w1, preferred_element_type=f32)                   # [B,128]
    mean1 = jnp.mean(h, axis=0, keepdims=True)
    c1 = h - mean1
    var1 = jnp.mean(c1 * c1, axis=0, keepdims=True)
    scale1 = g1 * jax.lax.rsqrt(var1 + BN_EPS)
    h = jnp.maximum(c1 * scale1 + be1, 0.0)

    # --- layer 2: Linear(64 -> 31), zero-padded to 128 output lanes ----------
    out = jnp.dot(h, w2, preferred_element_type=f32) + b2            # [B,128]

    # sigmoid only on the bernoulli column (index 2*D == 30), keep the rest.
    col = jax.lax.broadcasted_iota(jnp.int32, out.shape, 1)
    out = jnp.where(col == 2 * D, jax.nn.sigmoid(out), out)

    # single lane-dense store -> one writeback DMA
    out_ref[...] = out


def pack_params(params):
    """One-time packing of PyTorch-layout params into a single [272,128] slab.

    Hoisted out of the per-call path: call once, keep the result resident.
    """
    (w0, b0, g0, be0, w1, b1, g1, be1, w2, b2) = params
    del b0, b1  # cancelled by training-mode BatchNorm mean subtraction

    packed = jnp.zeros((PACK_ROWS, LANES), jnp.float32)
    packed = packed.at[ROW_W0:ROW_W0 + ZDIM, :H0].set(w0)          # (8,32)
    packed = packed.at[ROW_W1:ROW_W1 + H0, :H1].set(w1)            # (32,64)
    packed = packed.at[ROW_W2:ROW_W2 + H1, :OUT_DIM].set(w2)       # (64,31)
    packed = packed.at[ROW_P + 0, :H0].set(g0[0])
    packed = packed.at[ROW_P + 1, :H0].set(be0[0])
    packed = packed.at[ROW_P + 2, :H1].set(g1[0])
    packed = packed.at[ROW_P + 3, :H1].set(be1[0])
    packed = packed.at[ROW_P + 4, :OUT_DIM].set(b2[0])
    return packed


@jax.jit
def decoder_forward(z, packed):
    """z: [B, zdim] f32, packed: [272,128] f32 parameter slab.

    Returns (mu [B,15], sigma [B,15], bern [B]).
    BN uses whole-batch statistics, so the batch must live in one block
    (grid=()); any future batch tiling must keep one full BN batch per block.
    """
    B = z.shape[0]

    cost = pl.CostEstimate(
        flops=2 * B * (ZDIM * LANES + LANES * LANES + LANES * LANES),
        transcendentals=2 * LANES + B * LANES,       # rsqrt rows + sigmoid tile
        bytes_accessed=4 * (z.size + PACK_ROWS * LANES + B * LANES),
    )

    out = pl.pallas_call(
        _decoder_kernel,
        out_shape=jax.ShapeDtypeStruct((B, LANES), jnp.float32),
        in_specs=[
            pl.BlockSpec((B, ZDIM), lambda: (0, 0)),
            pl.BlockSpec((PACK_ROWS, LANES), lambda: (0, 0)),
        ],
        out_specs=pl.BlockSpec((B, LANES), lambda: (0, 0)),
        cost_estimate=cost,
    )(z, packed)

    # slices fold into the same jitted executable (lane-dense single result)
    return out[:, :D], out[:, D:2 * D], out[:, 2 * D]


def make_params(key):
    """Deterministic params mirroring the PyTorch layer shapes.

    PyTorch Linear stores weight (out,in); build that way then transpose to
    (in,out) for the kernel-side layout.
    """
    ks = jax.random.split(key, 6)

    def linear(kw, kb, fan_in, fan_out):
        bound = 1.0 / jnp.sqrt(fan_in)
        w = jax.random.uniform(kw, (fan_out, fan_in), jnp.float32, -bound, bound)
        b = jax.random.uniform(kb, (1, fan_out), jnp.float32, -bound, bound)
        return w.T, b   # (in, out), (1, out)

    w0, b0 = linear(ks[0], ks[1], ZDIM, H0)
    w1, b1 = linear(ks[2], ks[3], H0, H1)
    w2, b2 = linear(ks[4], ks[5], H1, OUT_DIM)

    # BatchNorm affine params (perturbed from defaults so the BN path is exercised)
    g0 = 1.0 + 0.1 * jnp.sin(jnp.arange(H0, dtype=jnp.float32)).reshape(1, H0)
    be0 = 0.05 * jnp.cos(jnp.arange(H0, dtype=jnp.float32)).reshape(1, H0)
    g1 = 1.0 + 0.1 * jnp.sin(jnp.arange(H1, dtype=jnp.float32)).reshape(1, H1)
    be1 = 0.05 * jnp.cos(jnp.arange(H1, dtype=jnp.float32)).reshape(1, H1)

    return (w0, b0, g0, be0, w1, b1, g1, be1, w2, b2)


def decoder_reference(z, params):
    """Pure-JAX reference with FULL fidelity (biases kept, two-pass BN)."""
    (w0, b0, g0, be0, w1, b1, g1, be1, w2, b2) = params

    def bn(h, g, be):
        m = jnp.mean(h, axis=0, keepdims=True)
        v = jnp.mean((h - m) ** 2, axis=0, keepdims=True)
        return (h - m) / jnp.sqrt(v + BN_EPS) * g + be

    h = jnp.maximum(bn(z @ w0 + b0, g0, be0), 0.0)
    h = jnp.maximum(bn(h @ w1 + b1, g1, be1), 0.0)
    out = h @ w2 + b2
    return out[:, :D], out[:, D:2 * D], jax.nn.sigmoid(out[:, 2 * D])


if __name__ == "__main__":
    key = jax.random.PRNGKey(0)
    kz, kp = jax.random.split(key)

    z = jax.random.normal(kz, (BATCH, ZDIM), dtype=jnp.float32)
    params = make_params(kp)

    # one-time packing (hoisted out of the per-call path)
    packed = jax.block_until_ready(pack_params(params))

    mu, sigma, bern = decoder_forward(z, packed)
    jax.block_until_ready((mu, sigma, bern))

    # sanity check against the full-fidelity pure-JAX reference
    mu_r, sigma_r, bern_r = decoder_reference(z, params)
    assert mu.shape == (BATCH, INPUT_SIZE - 1)
    assert sigma.shape == (BATCH, INPUT_SIZE - 1)
    assert bern.shape == (BATCH,)
    assert jnp.allclose(mu, mu_r, atol=2e-4, rtol=2e-4)
    assert jnp.allclose(sigma, sigma_r, atol=2e-4, rtol=2e-4)
    assert jnp.allclose(bern, bern_r, atol=2e-4, rtol=2e-4)

    print("KERNEL_OK")
</pallas_src>

<mosaic_0001>
module attributes {stable_mosaic.version = 11 : i64} {
  func.func @_decoder_kernel(%arg0: memref<8x8xf32, #tpu.memory_space<vmem>>, %arg1: memref<272x128xf32, #tpu.memory_space<vmem>>, %arg2: memref<8x128xf32, #tpu.memory_space<vmem>>) attributes {dimension_semantics = [], scalar_prefetch = 0 : i64, scratch_operands = 0 : i64, tpu.core_type = #tpu.core_type<tc>} {
    %c0 = arith.constant 0 : index
    %c0_0 = arith.constant 0 : index
    %0 = vector.load %arg1[%c0, %c0_0] : memref<272x128xf32, #tpu.memory_space<vmem>>, vector<8x128xf32>
    %c8 = arith.constant 8 : index
    %c0_1 = arith.constant 0 : index
    %1 = vector.load %arg1[%c8, %c0_1] : memref<272x128xf32, #tpu.memory_space<vmem>>, vector<128x128xf32>
    %c136 = arith.constant 136 : index
    %c0_2 = arith.constant 0 : index
    %2 = vector.load %arg1[%c136, %c0_2] : memref<272x128xf32, #tpu.memory_space<vmem>>, vector<128x128xf32>
    %c264 = arith.constant 264 : index
    %c0_3 = arith.constant 0 : index
    %3 = vector.load %arg1[%c264, %c0_3] : memref<272x128xf32, #tpu.memory_space<vmem>>, vector<1x128xf32>
    %c265 = arith.constant 265 : index
    %c0_4 = arith.constant 0 : index
    %4 = vector.load %arg1[%c265, %c0_4] : memref<272x128xf32, #tpu.memory_space<vmem>>, vector<1x128xf32>
    %c266 = arith.constant 266 : index
    %c0_5 = arith.constant 0 : index
    %5 = vector.load %arg1[%c266, %c0_5] : memref<272x128xf32, #tpu.memory_space<vmem>>, vector<1x128xf32>
    %c267 = arith.constant 267 : index
    %c0_6 = arith.constant 0 : index
    %6 = vector.load %arg1[%c267, %c0_6] : memref<272x128xf32, #tpu.memory_space<vmem>>, vector<1x128xf32>
    %c268 = arith.constant 268 : index
    %c0_7 = arith.constant 0 : index
    %7 = vector.load %arg1[%c268, %c0_7] : memref<272x128xf32, #tpu.memory_space<vmem>>, vector<1x128xf32>
    %c0_8 = arith.constant 0 : index
    %c0_9 = arith.constant 0 : index
    %8 = vector.load %arg0[%c0_8, %c0_9] : memref<8x8xf32, #tpu.memory_space<vmem>>, vector<8x8xf32>
    %cst = arith.constant dense<0.000000e+00> : vector<8x128xf32>
    %9 = tpu.matmul %8, %0, %cst {dimension_numbers = #tpu.dot_dimension_numbers<[1], [0], [0], [1], [0, 0, 1, 1], [], []>} : vector<8x8xf32>, vector<8x128xf32>, vector<8x128xf32> -> vector<8x128xf32>
    %cst_10 = arith.constant dense<0.000000e+00> : vector<128xf32>
    %10 = vector.multi_reduction <add>, %9, %cst_10 [0] : vector<8x128xf32> to vector<128xf32>
    %11 = vector.shape_cast %10 : vector<128xf32> to vector<1x128xf32>
    %cst_11 = arith.constant 8.000000e+00 : f32
    %12 = vector.broadcast %cst_11 : f32 to vector<1x128xf32>
    %13 = arith.divf %11, %12 : vector<1x128xf32>
    %14 = vector.broadcast %13 : vector<1x128xf32> to vector<8x128xf32>
    %15 = arith.subf %9, %14 : vector<8x128xf32>
    %16 = arith.mulf %15, %15 : vector<8x128xf32>
    %cst_12 = arith.constant dense<0.000000e+00> : vector<128xf32>
    %17 = vector.multi_reduction <add>, %16, %cst_12 [0] : vector<8x128xf32> to vector<128xf32>
    %18 = vector.shape_cast %17 : vector<128xf32> to vector<1x128xf32>
    %cst_13 = arith.constant 8.000000e+00 : f32
    %19 = vector.broadcast %cst_13 : f32 to vector<1x128xf32>
    %20 = arith.divf %18, %19 : vector<1x128xf32>
    %cst_14 = arith.constant 9.99999974E-6 : f32
    %21 = vector.broadcast %cst_14 : f32 to vector<1x128xf32>
    %22 = arith.addf %20, %21 : vector<1x128xf32>
    %23 = math.rsqrt %22 : vector<1x128xf32>
    %24 = arith.mulf %3, %23 : vector<1x128xf32>
    %25 = vector.broadcast %24 : vector<1x128xf32> to vector<8x128xf32>
    %26 = arith.mulf %15, %25 : vector<8x128xf32>
    %27 = vector.broadcast %4 : vector<1x128xf32> to vector<8x128xf32>
    %28 = arith.addf %26, %27 : vector<8x128xf32>
    %cst_15 = arith.constant 0.000000e+00 : f32
    %29 = vector.broadcast %cst_15 : f32 to vector<8x128xf32>
    %30 = arith.maximumf %28, %29 : vector<8x128xf32>
    %cst_16 = arith.constant dense<0.000000e+00> : vector<8x128xf32>
    %31 = tpu.matmul %30, %1, %cst_16 {dimension_numbers = #tpu.dot_dimension_numbers<[1], [0], [0], [1], [0, 0, 1, 1], [], []>} : vector<8x128xf32>, vector<128x128xf32>, vector<8x128xf32> -> vector<8x128xf32>
    %cst_17 = arith.constant dense<0.000000e+00> : vector<128xf32>
    %32 = vector.multi_reduction <add>, %31, %cst_17 [0] : vector<8x128xf32> to vector<128xf32>
    %33 = vector.shape_cast %32 : vector<128xf32> to vector<1x128xf32>
    %cst_18 = arith.constant 8.000000e+00 : f32
    %34 = vector.broadcast %cst_18 : f32 to vector<1x128xf32>
    %35 = arith.divf %33, %34 : vector<1x128xf32>
    %36 = vector.broadcast %35 : vector<1x128xf32> to vector<8x128xf32>
    %37 = arith.subf %31, %36 : vector<8x128xf32>
    %38 = arith.mulf %37, %37 : vector<8x128xf32>
    %cst_19 = arith.constant dense<0.000000e+00> : vector<128xf32>
    %39 = vector.multi_reduction <add>, %38, %cst_19 [0] : vector<8x128xf32> to vector<128xf32>
    %40 = vector.shape_cast %39 : vector<128xf32> to vector<1x128xf32>
    %cst_20 = arith.constant 8.000000e+00 : f32
    %41 = vector.broadcast %cst_20 : f32 to vector<1x128xf32>
    %42 = arith.divf %40, %41 : vector<1x128xf32>
    %cst_21 = arith.constant 9.99999974E-6 : f32
    %43 = vector.broadcast %cst_21 : f32 to vector<1x128xf32>
    %44 = arith.addf %42, %43 : vector<1x128xf32>
    %45 = math.rsqrt %44 : vector<1x128xf32>
    %46 = arith.mulf %5, %45 : vector<1x128xf32>
    %47 = vector.broadcast %46 : vector<1x128xf32> to vector<8x128xf32>
    %48 = arith.mulf %37, %47 : vector<8x128xf32>
    %49 = vector.broadcast %6 : vector<1x128xf32> to vector<8x128xf32>
    %50 = arith.addf %48, %49 : vector<8x128xf32>
    %cst_22 = arith.constant 0.000000e+00 : f32
    %51 = vector.broadcast %cst_22 : f32 to vector<8x128xf32>
    %52 = arith.maximumf %50, %51 : vector<8x128xf32>
    %cst_23 = arith.constant dense<0.000000e+00> : vector<8x128xf32>
    %53 = tpu.matmul %52, %2, %cst_23 {dimension_numbers = #tpu.dot_dimension_numbers<[1], [0], [0], [1], [0, 0, 1, 1], [], []>} : vector<8x128xf32>, vector<128x128xf32>, vector<8x128xf32> -> vector<8x128xf32>
    %54 = vector.broadcast %7 : vector<1x128xf32> to vector<8x128xf32>
    %55 = arith.addf %53, %54 : vector<8x128xf32>
    %56 = tpu.iota {dimensions = array<i32: 1>} : vector<8x128xi32>
    %c30_i32 = arith.constant 30 : i32
    %57 = vector.broadcast %c30_i32 : i32 to vector<8x128xi32>
    %58 = arith.cmpi eq, %56, %57 : vector<8x128xi32>
    %59 = arith.negf %55 : vector<8x128xf32>
    %60 = math.exp %59 : vector<8x128xf32>
    %cst_24 = arith.constant 1.000000e+00 : f32
    %61 = vector.broadcast %cst_24 : f32 to vector<8x128xf32>
    %62 = arith.addf %61, %60 : vector<8x128xf32>
    %63 = arith.divf %61, %62 : vector<8x128xf32>
    %64 = arith.select %58, %63, %55 : vector<8x128xi1>, vector<8x128xf32>
    %c0_25 = arith.constant 0 : index
    %c0_26 = arith.constant 0 : index
    %65 = vector.load %arg2[%c0_25, %c0_26] : memref<8x128xf32, #tpu.memory_space<vmem>>, vector<8x128xf32>
    tpu.vector_store %arg2[%c0_25, %c0_26], %64 {strides = array<i32>} : memref<8x128xf32, #tpu.memory_space<vmem>>, vector<8x128xf32>,
    return
  }
}

</mosaic_0001>

<bundles_post_ra>
// kernel: decoder_forward.1
= control target key start
LH: loop header
LB: loop body
LE: loop exit
PB: predicated region body
PF: predicated region fallthrough
CT: control target
= control target key end

     0   :  { %7 = vsyncpa [#allocation3], 0  ;;  %s680_s0 = inlined_call_operand.hbm [shape: f32[8,8], index: 0, kind: input, shape index: {}]   ;;  %s681_s1 = inlined_call_operand.hbm [shape: f32[272,128], index: 1, kind: input, shape index: {}]   ;;  %s682_s2 = inlined_call_operand.vmem [shape: f32[8,128], index: 2, kind: output, shape index: {}]  }
   0x1   :  { %8 = vsyncpa [#allocation5], 0  ;;  %s599_s9 = smov [#allocation2]   ;;  %s600_s11 = smov [#allocation4]  }
   0x2   :  { %s15_s10 = sshll.u32 %s599_s9, 4  ;;  %s24_s12 = sshll.u32 %s600_s11, 4  ;;  %s16_s10 = int_to_ptr.vmem [resolvable:$true] %s15_s10  ;;  %s621_s12 = int_to_ptr.vmem [resolvable:$true] %s24_s12 }
   0x3   :  { %s551_s15 = scalar_lea.hbm %s680_s0, 128 }
   0x4   :  { %p552_p0 = scmp.ne.s32.totalorder %s680_s0, %s551_s15  ;;  %p555_p1 = scmp.lt.u32.totalorder %s551_s15, %s680_s0 }
   0x6   :  { %p557_p2 = pnand %p555_p1, %p552_p0 }
   0x8   :  { %560 = shalt.err (!%p557_p2)
}
   0x9   :  { %s561_s20 = scalar_lea.vmem %s16_s10, 128  ;;  %p566_p4 = scmp.lt.s32.totalorder %s16_s10, %s16_s10 }
   0xa   :  { %p562_p3 = scmp.ne.s32.totalorder %s16_s10, %s561_s20  ;;  %p567_p5 = scmp.lt.s32.totalorder %s561_s20, %s561_s20 }
   0xc   :  { %p568_p6 = por %p567_p5, %p566_p4 }
   0xe   :  { %p569_p7 = pnand %p568_p6, %p562_p3 }
  0x10   :  { %572 = shalt.err (!%p569_p7)
}
  0x11   :  { %18 = dma.hbm_to_vmem [thread:$0]  %s680_s0, 128, %s16_s10, [#allocation3]  }
  0x12   :  { %s573_s25 = scalar_lea.hbm %s681_s1, 4352 }
  0x13   :  { %p574_p8 = scmp.ne.s32.totalorder %s681_s1, %s573_s25  ;;  %p577_p9 = scmp.lt.u32.totalorder %s573_s25, %s681_s1 }
  0x15   :  { %p579_p10 = pnand %p577_p9, %p574_p8 }
  0x17   :  { %582 = shalt.err (!%p579_p10)
}
  0x18   :  { %s583_s30 = scalar_lea.vmem %s621_s12, 4352  ;;  %p588_p12 = scmp.lt.s32.totalorder %s621_s12, %s621_s12 }
  0x19   :  { %p584_p11 = scmp.ne.s32.totalorder %s621_s12, %s583_s30  ;;  %p589_p13 = scmp.lt.s32.totalorder %s583_s30, %s583_s30 }
  0x1b   :  { %p590_p0 = por %p589_p13, %p588_p12 }
  0x1d   :  { %p591_p1 = pnand %p590_p0, %p584_p11 }
  0x1f   :  { %594 = shalt.err (!%p591_p1)
}
  0x20   :  { %s601_s0 = smov 128   ;;  %s602_s3 = smov 8  }
  0x21   :  { %30 = dma.hbm_to_vmem [thread:$0]  %s681_s1, 4352, %s621_s12, [#allocation5], %s601_s0, %s601_s0, %s602_s3  }
  0x22   :  { %595 = dma.done.wait [#allocation3], 128  }
  0x23   :  { %596 = vsyncadd [#allocation3], 4294967168 }
  0x24   :  { %597 = dma.done.wait [#allocation5], 4352  }
  0x25   :  { %598 = vsyncadd [#allocation5], 4294962944  ;;  %v603_v0 = vmov 0.0   ;;  %vm604_vm0 = vmmov 0   ;;  %vm76_vm1 = vcmask 64512   ;;  %v37_v1 = vld [vmem:[#allocation4] sm:$0xff]  ;;  %v170_v47 = vlaneseq }
  0x26   :  { %413 = vmatprep.subr.mxu0 %v603_v0  ;;  %415 = vmatprep.mubr.msk.f32.mxu0 %vm604_vm0, %v603_v0  ;;  %v75_v2 = vld [vmem:[#allocation2] sm:$0xff]  ;;  %v38_v3 = vld [vmem:[#allocation4 + $0x8] sm:$0xff]  ;;  %v39_v4 = vld [vmem:[#allocation4 + $0x10] sm:$0xff]  ;;  %v605_v6 = vmov 0.0|0.0  }
  0x27   :  { %450 = vmatprep.mubr.msk.f32.mxu1 %vm604_vm0, %v603_v0  ;;  %414 = vmatpush3.msra.mxu0 %v37_v1  ;;  %v489_v5 = vpack.c.bf16 %v39_v4, %v38_v3  ;;  %v40_v7 = vld [vmem:[#allocation4 + $0x18] sm:$0xff]  ;;  %v41_v8 = vld [vmem:[#allocation4 + $0x20] sm:$0xff]  ;;  %v42_v10 = vld [vmem:[#allocation4 + $0x28] sm:$0xff]  ;;  %v662_v48 = vshrl.u32 %v170_v47, 7 }
  0x28   :  { %416 = vmatmul.mubr.msk.f32.vlgmr.msra.gmra.mrb[0].mxu0 %vm76_vm1, %v75_v2  ;;  %488 = vmatprep.subr.bf16.mxu1 %v605_v6  ;;  %v492_v9 = vpack.c.bf16 %v41_v8, %v40_v7  ;;  %v43_v11 = vld [vmem:[#allocation4 + $0x30] sm:$0xff]  ;;  %v44_v13 = vld [vmem:[#allocation4 + $0x38] sm:$0xff]  ;;  %v45_v14 = vld [vmem:[#allocation4 + $0x40] sm:$0xff] }
  0x29   :  { %485 = vmatprep.mubr.msk.f32.mxu0 %vm604_vm0, %v603_v0  ;;  %512 = vmatprep.subr.bf16.mxu0 %v605_v6  ;;  %v495_v12 = vpack.c.bf16 %v43_v11, %v42_v10  ;;  %v498_v15 = vpack.c.bf16 %v45_v14, %v44_v13  ;;  %v46_v16 = vld [vmem:[#allocation4 + $0x48] sm:$0xff]  ;;  %v47_v17 = vld [vmem:[#allocation4 + $0x50] sm:$0xff]  ;;  %v48_v19 = vld [vmem:[#allocation4 + $0x58] sm:$0xff]  ;;  %v172_v50 = vsub.s32 0, %v662_v48 }
  0x2a   :  { %490 = vmatpush3.bf16.msra.mxu1 %v489_v5  ;;  %v501_v18 = vpack.c.bf16 %v47_v17, %v46_v16  ;;  %v49_v20 = vld [vmem:[#allocation4 + $0x60] sm:$0xff]  ;;  %v50_v22 = vld [vmem:[#allocation4 + $0x68] sm:$0xff]  ;;  %v51_v23 = vld [vmem:[#allocation4 + $0x70] sm:$0xff] }
  0x2b   :  { %491 = vmatprep.subr.bf16.mxu1 %v605_v6  ;;  %v504_v21 = vpack.c.bf16 %v49_v20, %v48_v19  ;;  %v507_v24 = vpack.c.bf16 %v51_v23, %v50_v22  ;;  %v52_v25 = vld [vmem:[#allocation4 + $0x78] sm:$0xff]  ;;  %v53_v26 = vld [vmem:[#allocation4 + $0x80] sm:$0xff]  ;;  %v70_v49 = vld [vmem:[#allocation4 + $0x108] sm:$0x1] }
  0x2c   :  { %v510_v27 = vpack.c.bf16 %v53_v26, %v52_v25  ;;  %v373_v54 = vld [vmem:[#allocation4 + $0x109] ss:$0 sm:$0xff]  ;;  %v55_v59 = vld [vmem:[#allocation4 + $0x90] sm:$0xff]  ;;  %v56_v61 = vld [vmem:[#allocation4 + $0x98] sm:$0xff] }
  0x2d   :  { %v54_v58 = vld [vmem:[#allocation4 + $0x88] sm:$0xff]  ;;  %v57_v62 = vld [vmem:[#allocation4 + $0xa0] sm:$0xff]  ;;  %v59_v1 = vld [vmem:[#allocation4 + $0xb0] sm:$0xff] }
  0x2e   :  { %493 = vmatpush3.bf16.msra.mxu1 %v492_v9  ;;  %v513_v60 = vpack.c.bf16 %v55_v59, %v54_v58  ;;  %v516_v63 = vpack.c.bf16 %v57_v62, %v56_v61  ;;  %v58_v0 = vld [vmem:[#allocation4 + $0xa8] sm:$0xff]  ;;  %v60_v3 = vld [vmem:[#allocation4 + $0xb8] sm:$0xff]  ;;  %v61_v4 = vld [vmem:[#allocation4 + $0xc0] sm:$0xff] }
  0x2f   :  { %494 = vmatprep.subr.bf16.mxu1 %v605_v6  ;;  %v519_v2 = vpack.c.bf16 %v59_v1, %v58_v0  ;;  %v522_v5 = vpack.c.bf16 %v61_v4, %v60_v3  ;;  %v62_v7 = vld [vmem:[#allocation4 + $0xc8] sm:$0xff]  ;;  %v63_v8 = vld [vmem:[#allocation4 + $0xd0] sm:$0xff]  ;;  %v64_v10 = vld [vmem:[#allocation4 + $0xd8] sm:$0xff] }
  0x30   :  { %514 = vmatpush3.bf16.msra.mxu0 %v513_v60  ;;  %v525_v9 = vpack.c.bf16 %v63_v8, %v62_v7  ;;  %v65_v11 = vld [vmem:[#allocation4 + $0xe0] sm:$0xff]  ;;  %v66_v13 = vld [vmem:[#allocation4 + $0xe8] sm:$0xff]  ;;  %v67_v14 = vld [vmem:[#allocation4 + $0xf0] sm:$0xff] }
  0x31   :  { %515 = vmatprep.subr.bf16.mxu0 %v605_v6  ;;  %v68_v16 = vld [vmem:[#allocation4 + $0xf8] sm:$0xff]  ;;  %v69_v17 = vld [vmem:[#allocation4 + $0x100] sm:$0xff] }
  0x32   :  { %496 = vmatpush3.bf16.msra.mxu1 %v495_v12  ;;  %v528_v12 = vpack.c.bf16 %v65_v11, %v64_v10 }
  0x33   :  { %497 = vmatprep.subr.bf16.mxu1 %v605_v6 }
  0x34   :  { %517 = vmatpush3.bf16.msra.mxu0 %v516_v63 }
  0x35   :  { %518 = vmatprep.subr.bf16.mxu0 %v605_v6 }
  0x36   :  { %499 = vmatpush3.bf16.msra.mxu1 %v498_v15  ;;  %v531_v15 = vpack.c.bf16 %v67_v14, %v66_v13 }
  0x37   :  { %500 = vmatprep.subr.bf16.mxu1 %v605_v6 }
  0x38   :  { %520 = vmatpush3.bf16.msra.mxu0 %v519_v2 }
  0x39   :  { %521 = vmatprep.subr.bf16.mxu0 %v605_v6 }
  0x3a   :  { %502 = vmatpush3.bf16.msra.mxu1 %v501_v18  ;;  %v534_v18 = vpack.c.bf16 %v69_v17, %v68_v16 }
  0x3b   :  { %503 = vmatprep.subr.bf16.mxu1 %v605_v6 }
  0x3c   :  { %523 = vmatpush3.bf16.msra.mxu0 %v522_v5 }
  0x3d   :  { %524 = vmatprep.subr.bf16.mxu0 %v605_v6 }
  0x3e   :  { %505 = vmatpush3.bf16.msra.mxu1 %v504_v21 }
  0x3f   :  { %506 = vmatprep.subr.bf16.mxu1 %v605_v6 }
  0x40   :  { %526 = vmatpush3.bf16.msra.mxu0 %v525_v9 }
  0x41   :  { %527 = vmatprep.subr.bf16.mxu0 %v605_v6 }
  0x42   :  { %508 = vmatpush3.bf16.msra.mxu1 %v507_v24 }
  0x43   :  { %509 = vmatprep.subr.bf16.mxu1 %v605_v6 }
  0x44   :  { %529 = vmatpush3.bf16.msra.mxu0 %v528_v12 }
  0x45   :  { %530 = vmatprep.subr.bf16.mxu0 %v605_v6 }
  0x46   :  { %511 = vmatpush3.bf16.msra.mxu1 %v510_v27 }
  0x48   :  { %532 = vmatpush3.bf16.msra.mxu0 %v531_v15 }
  0x49   :  { %533 = vmatprep.subr.bf16.mxu0 %v605_v6 }
  0x4c   :  { %535 = vmatpush3.bf16.msra.mxu0 %v534_v18 }
  0xfb   :  { %v146_v28 = vpop.f32.mrb[0].mxu0 }
  0xfc   :  { %v150_v29 = vrot.slane %v146_v28, 4  ;;  %v417_v30 = vpop.f32.mrb[1].mxu0 }
  0xfe   :  { %v151_v31 = vadd.f32 %v150_v29, %v146_v28 }
 0x100   :  { %v152_v32 = vrot.slane %v151_v31, 2 }
 0x102   :  { %v153_v33 = vadd.f32 %v152_v32, %v151_v31 }
 0x104   :  { %v154_v34 = vrot.slane %v153_v33, 1 }
 0x106   :  { %v155_v35 = vadd.f32 %v154_v34, %v153_v33 }
 0x108   :  { %v157_v36 = vmul.f32 0.125, %v155_v35 }
 0x10a   :  { %v158_v37 = vsub.f32 %v146_v28, %v157_v36 }
 0x10c   :  { %v159_v38 = vmul.f32 %v158_v37, %v158_v37 }
 0x10e   :  { %v160_v39 = vrot.slane %v159_v38, 4 }
 0x110   :  { %v161_v40 = vadd.f32 %v160_v39, %v159_v38 }
 0x112   :  { %v162_v41 = vrot.slane %v161_v40, 2 }
 0x114   :  { %v163_v42 = vadd.f32 %v162_v41, %v161_v40  ;;  %v374_v41 = vld [vmem:[#allocation4 + $0x10b] ss:$0 sm:$0xff] }
 0x116   :  { %v164_v43 = vrot.slane %v163_v42, 1 }
 0x118   :  { %v165_v44 = vadd.f32 %v164_v43, %v163_v42 }
 0x11a   :  { %v166_v45 = vmul.f32 0.125, %v165_v44 }
 0x11c   :  { %v167_v46 = vadd.f32 1e-05, %v166_v45  ;;  %v375_v45 = vld [vmem:[#allocation4 + $0x10c] ss:$0 sm:$0xff] }
 0x11e   :  { %543 = vrsqrt.f32 %v167_v46 }
 0x128   :  { %v544_v51 = vpop.eup %543 }
 0x129   :  { %v169_v52 = vmul.f32 %v544_v51, %v70_v49 }
 0x12b   :  { %v173_v53 = vrot.slane %v169_v52, %v172_v50 }
 0x12d   :  { %v174_v55 = vmul.f32 %v173_v53, %v158_v37  ;;  %v72_v37 = vld [vmem:[#allocation4 + $0x10a] sm:$0x1] }
 0x12f   :  { %v179_v56 = vadd.f32 %v373_v54, %v174_v55  ;;  %v356_v55 = vand.u32 127, %v170_v47 }
 0x131   :  { %v180_v57 = vmax.f32 %v179_v56, 0.0  ;;  %vm357_vm2 = vcmp.eq.s32.totalorder %v356_v55, 30 }
 0x133   :  { %451 = vmatmul.mubr.f32.vlgmr.msra.gmra.mrb[0].mxu1 %v180_v57 }
 0x206   :  { %v247_v19 = vpop.f32.mrb[0].mxu1 }
 0x207   :  { %v251_v20 = vrot.slane %v247_v19, 4  ;;  %v452_v21 = vpop.f32.mrb[1].mxu1 }
 0x209   :  { %v252_v22 = vadd.f32 %v251_v20, %v247_v19 }
 0x20b   :  { %v253_v23 = vrot.slane %v252_v22, 2 }
 0x20d   :  { %v254_v24 = vadd.f32 %v253_v23, %v252_v22 }
 0x20f   :  { %v255_v25 = vrot.slane %v254_v24, 1 }
 0x211   :  { %v256_v26 = vadd.f32 %v255_v25, %v254_v24 }
 0x213   :  { %v257_v27 = vmul.f32 0.125, %v256_v26 }
 0x215   :  { %v258_v28 = vsub.f32 %v247_v19, %v257_v27 }
 0x217   :  { %v259_v29 = vmul.f32 %v258_v28, %v258_v28 }
 0x219   :  { %v260_v30 = vrot.slane %v259_v29, 4 }
 0x21b   :  { %v261_v31 = vadd.f32 %v260_v30, %v259_v29 }
 0x21d   :  { %v262_v32 = vrot.slane %v261_v31, 2 }
 0x21f   :  { %v263_v33 = vadd.f32 %v262_v32, %v261_v31 }
 0x221   :  { %v264_v6 = vrot.slane %v263_v33, 1 }
 0x223   :  { %v265_v34 = vadd.f32 %v264_v6, %v263_v33 }
 0x225   :  { %v266_v35 = vmul.f32 0.125, %v265_v34 }
 0x227   :  { %v267_v36 = vadd.f32 1e-05, %v266_v35 }
 0x229   :  { %545 = vrsqrt.f32 %v267_v36 }
 0x233   :  { %v546_v38 = vpop.eup %545 }
 0x234   :  { %v269_v39 = vmul.f32 %v546_v38, %v72_v37 }
 0x236   :  { %v273_v40 = vrot.slane %v269_v39, %v172_v50 }
 0x238   :  { %v274_v42 = vmul.f32 %v273_v40, %v258_v28 }
 0x23a   :  { %v279_v43 = vadd.f32 %v374_v41, %v274_v42 }
 0x23c   :  { %v280_v44 = vmax.f32 %v279_v43, 0.0 }
 0x23e   :  { %486 = vmatmul.mubr.f32.vlgmr.msra.gmra.mrb[2].mxu0 %v280_v44 }
 0x311   :  { %v351_v46 = vpop.f32.mrb[2].mxu0 }
 0x312   :  { %v352_v49 = vadd.f32 %v375_v45, %v351_v46  ;;  %v487_v51 = vpop.f32.mrb[3].mxu0 }
 0x314   :  { %v376_v52 = vmul.f32 -1.442695, %v352_v49 }
 0x316   :  { %547 = vpow2.f32 %v376_v52 }
 0x320   :  { %v548_v53 = vpop.eup %547 }
 0x321   :  { %v361_v54 = vadd.f32 1.0, %v548_v53 }
 0x323   :  { %549 = vrcp.f32 %v361_v54 }
 0x32d   :  { %v550_v56 = vpop.eup %549 }
 0x32e   :  { %v364_v48 = vsel %vm357_vm2, %v550_v56, %v352_v49 }
 0x32f   :  { %365 = vst [vmem:[%s682_s2] sm:$0xff] %v364_v48 }
 0x330   :  { %370 = vsyncpa [#allocation3], 1 }
 0x331   :  { %371 = vsyncpa [#allocation5], 1 }

</bundles_post_ra>
